<compile_context>
chip_gen: v6e
topology: v6e:2x2x1
jax: 0.10.0
libtpu: 0.0.40
codegen_flags: <defaults>
</compile_context>

<pallas_src>
import functools

import jax
import jax.numpy as jnp
from jax.experimental import pallas as pl
from jax.experimental.pallas import tpu as pltpu


# --------------------------------------------------------------------------- tiling helpers
def _row_tile(n: int, preferred: int) -> int:
    """Largest power-of-two tile in [8, preferred] dividing n; else the full extent."""
    best = None
    t = 8
    while t <= min(preferred, n):
        if n % t == 0:
            best = t
        t *= 2
    return best if best is not None else n


def _pick_row_tile(n: int, preferred: int) -> int:
    """Row tile that keeps >= 2 grid steps when possible (v7x megacore)."""
    pref = preferred
    if n >= 16:
        pref = min(pref, n // 2)
    return _row_tile(n, pref)


def _heads_per_block(num_heads: int, head_dim: int) -> int:
    """Smallest head group whose lane width is a multiple of 128."""
    for h in range(1, num_heads + 1):
        if num_heads % h == 0 and (h * head_dim) % 128 == 0:
            return h
    return num_heads


# --------------------------------------------------------------------------- kernels
def qkv_proj_kernel(x_ref, w_ref, b_ref, qkv_ref):
    # x:(TB,H), w:(3H,H) untransposed -> contract last dims: y = x @ W_qkv^T (native-dtype MXU, f32 acc)
    y = jax.lax.dot_general(x_ref[...], w_ref[...], (((1,), (1,)), ((), ())),
                            preferred_element_type=jnp.float32)          # (TB, 3H) f32
    qkv_ref[...] = (y + b_ref[...].astype(jnp.float32)).astype(qkv_ref.dtype)


def attention_kernel(q_ref, k_ref, v_ref, o_ref, *, scale, head_dim, heads_per_block):
    # q:(TQ, HB*D)  k,v:(S, HB*D)  o:(TQ, HB*D); per-head attention inside one 128-lane block.
    D = head_dim
    outs = []
    for j in range(heads_per_block):
        q = q_ref[:, j * D:(j + 1) * D]                                  # native dtype (bf16)
        k = k_ref[:, j * D:(j + 1) * D]
        v = v_ref[:, j * D:(j + 1) * D]
        s = jax.lax.dot_general(q, k, (((1,), (1,)), ((), ())),
                                preferred_element_type=jnp.float32) * scale   # (TQ, S) f32
        m = jnp.max(s, axis=-1, keepdims=True)
        p = jnp.exp(s - m)                                               # f32 softmax math
        l = jnp.sum(p, axis=-1, keepdims=True)
        o = jnp.dot(p.astype(v.dtype), v, preferred_element_type=jnp.float32)  # bf16 PV matmul
        outs.append(o * pl.reciprocal(l, approx=True))
    o_ref[...] = jnp.concatenate(outs, axis=-1).astype(o_ref.dtype)      # 128-lane dense store


def output_layernorm_kernel(a_ref, res_ref, w_ref, b_ref, g_ref, bb_ref, o_ref, *, eps):
    # a:(TB,H), w:(H,H) untransposed -> y = a @ W_o^T + b_o + residual, then LayerNorm (f32 math).
    y = jax.lax.dot_general(a_ref[...], w_ref[...], (((1,), (1,)), ((), ())),
                            preferred_element_type=jnp.float32)          # (TB, H) f32
    y = y + b_ref[...].astype(jnp.float32) + res_ref[...].astype(jnp.float32)
    mean = jnp.mean(y, axis=-1, keepdims=True)
    c = y - mean
    var = jnp.mean(c * c, axis=-1, keepdims=True)
    inv = jax.lax.rsqrt(var + eps)
    o_ref[...] = (c * inv * g_ref[...].astype(jnp.float32)
                  + bb_ref[...].astype(jnp.float32)).astype(o_ref.dtype)


# --------------------------------------------------------------------------- wrapper
def bert_attention(hidden_states, w_qkv, b_qkv, w_o, b_o, gamma, beta,
                   *, num_heads, eps=1e-12, token_block=512):
    """Forward of BertAttention for flattened tokens hidden_states: (S, H)."""
    S, H = hidden_states.shape
    assert H % num_heads == 0
    D = H // num_heads
    scale = float(D) ** -0.5
    dtype = hidden_states.dtype
    isz = jnp.dtype(dtype).itemsize

    TB = _pick_row_tile(S, token_block)
    HB = _heads_per_block(num_heads, D)       # heads per attention block (lane density)
    W = HB * D                                # lane width of one attention block
    NP = num_heads // HB                      # number of head groups
    assert W % 128 == 0 or W == H, "attention block width must be 128-lane dense"

    parallel1 = pltpu.CompilerParams(dimension_semantics=("parallel",))
    parallel2 = pltpu.CompilerParams(dimension_semantics=("parallel", "parallel"))

    # ---- 1) fused QKV projection: qkv = hidden @ W_qkv^T + b_qkv -----------------
    qkv = pl.pallas_call(
        qkv_proj_kernel,
        grid=(S // TB,),
        in_specs=[pl.BlockSpec((TB, H), lambda i: (i, 0)),
                  pl.BlockSpec((3 * H, H), lambda i: (0, 0)),   # untransposed, VMEM-resident
                  pl.BlockSpec((1, 3 * H), lambda i: (0, 0))],
        out_specs=pl.BlockSpec((TB, 3 * H), lambda i: (i, 0)),
        out_shape=jax.ShapeDtypeStruct((S, 3 * H), dtype),
        compiler_params=parallel1,
        cost_estimate=pl.CostEstimate(
            flops=2 * S * H * 3 * H, transcendentals=0,
            bytes_accessed=isz * (S * H + 3 * H * H + 3 * H + S * 3 * H)),
    )(hidden_states, w_qkv, b_qkv.reshape(1, 3 * H))

    # ---- 2) multi-head attention, q/k/v read straight from the (S, 3H) buffer -----
    # Column-block layout of qkv at width W: q -> block hp, k -> NP+hp, v -> 2*NP+hp.
    TQ = TB
    attn = pl.pallas_call(
        functools.partial(attention_kernel, scale=scale, head_dim=D,
                          heads_per_block=HB),
        grid=(NP, S // TQ),                  # heads leading -> K/V stay resident per core
        in_specs=[pl.BlockSpec((TQ, W), lambda hp, i: (i, hp)),
                  pl.BlockSpec((S, W), lambda hp, i: (0, NP + hp)),
                  pl.BlockSpec((S, W), lambda hp, i: (0, 2 * NP + hp))],
        out_specs=pl.BlockSpec((TQ, W), lambda hp, i: (i, hp)),
        out_shape=jax.ShapeDtypeStruct((S, H), dtype),   # already flattened (S, H) layout
        compiler_params=parallel2,
        cost_estimate=pl.CostEstimate(
            flops=4 * num_heads * S * S * D,
            transcendentals=num_heads * S * S,
            bytes_accessed=isz * (3 * S * H + S * H)),
    )(qkv, qkv, qkv)

    # ---- 3) output projection + residual + LayerNorm (fused) ---------------------
    out = pl.pallas_call(
        functools.partial(output_layernorm_kernel, eps=eps),
        grid=(S // TB,),
        in_specs=[pl.BlockSpec((TB, H), lambda i: (i, 0)),    # attention output
                  pl.BlockSpec((TB, H), lambda i: (i, 0)),    # residual (module input)
                  pl.BlockSpec((H, H), lambda i: (0, 0)),     # W_o untransposed, resident
                  pl.BlockSpec((1, H), lambda i: (0, 0)),     # b_o
                  pl.BlockSpec((1, H), lambda i: (0, 0)),     # LayerNorm gamma
                  pl.BlockSpec((1, H), lambda i: (0, 0))],    # LayerNorm beta
        out_specs=pl.BlockSpec((TB, H), lambda i: (i, 0)),
        out_shape=jax.ShapeDtypeStruct((S, H), dtype),
        compiler_params=parallel1,
        cost_estimate=pl.CostEstimate(
            flops=2 * S * H * H + 10 * S * H, transcendentals=S,
            bytes_accessed=isz * (3 * S * H + H * H + 3 * H)),
    )(attn, hidden_states, w_o, b_o.reshape(1, H),
      gamma.reshape(1, H), beta.reshape(1, H))
    return out


# --------------------------------------------------------------------------- demo
if __name__ == "__main__":
    hidden_size = 128
    num_heads = 2
    head_dim = hidden_size // num_heads     # 64 -> exercises 2-heads-per-block path
    seq = 8
    eps = 1e-12
    dtype = jnp.bfloat16                    # native serving dtype -> bf16 MXU passes

    key = jax.random.PRNGKey(0)
    ks = jax.random.split(key, 7)

    hidden = jax.random.normal(ks[0], (seq, hidden_size), jnp.float32).astype(dtype)
    w_qkv = (0.05 * jax.random.normal(ks[1], (3 * hidden_size, hidden_size), jnp.float32)).astype(dtype)
    b_qkv = (0.02 * jax.random.normal(ks[2], (3 * hidden_size,), jnp.float32)).astype(dtype)
    w_o = (0.05 * jax.random.normal(ks[3], (hidden_size, hidden_size), jnp.float32)).astype(dtype)
    b_o = (0.02 * jax.random.normal(ks[4], (hidden_size,), jnp.float32)).astype(dtype)
    gamma = 1.0 + 0.1 * jax.random.normal(ks[5], (hidden_size,), jnp.float32)
    beta = 0.1 * jax.random.normal(ks[6], (hidden_size,), jnp.float32)

    out = bert_attention(hidden, w_qkv, b_qkv, w_o, b_o, gamma, beta,
                         num_heads=num_heads, eps=eps)
    out = jax.block_until_ready(out)

    # ---- pure-JAX f32 reference on the same (bf16-valued) parameters --------------
    hf = hidden.astype(jnp.float32)
    wq = w_qkv.astype(jnp.float32)
    bq = b_qkv.astype(jnp.float32)
    wo = w_o.astype(jnp.float32)
    bo = b_o.astype(jnp.float32)
    qkv_r = hf @ wq.T + bq
    q_r, k_r, v_r = jnp.split(qkv_r, 3, axis=-1)
    qh_r = q_r.reshape(seq, num_heads, head_dim).transpose(1, 0, 2)
    kh_r = k_r.reshape(seq, num_heads, head_dim).transpose(1, 0, 2)
    vh_r = v_r.reshape(seq, num_heads, head_dim).transpose(1, 0, 2)
    s_r = jnp.einsum("hqd,hkd->hqk", qh_r, kh_r) * (head_dim ** -0.5)
    p_r = jax.nn.softmax(s_r, axis=-1)
    a_r = jnp.einsum("hqk,hkd->hqd", p_r, vh_r).transpose(1, 0, 2).reshape(seq, hidden_size)
    y_r = a_r @ wo.T + bo + hf
    mean_r = y_r.mean(-1, keepdims=True)
    var_r = ((y_r - mean_r) ** 2).mean(-1, keepdims=True)
    ref = (y_r - mean_r) / jnp.sqrt(var_r + eps) * gamma + beta

    assert out.shape == (seq, hidden_size)
    assert out.dtype == dtype
    err = jnp.max(jnp.abs(out.astype(jnp.float32) - ref))
    assert err < 5e-2, f"mismatch vs reference: max abs err {err}"
    print("KERNEL_OK")
</pallas_src>

<mosaic_0001>
module attributes {stable_mosaic.version = 11 : i64} {
  func.func @qkv_proj_kernel(%arg0: i32, %arg1: memref<8x128xbf16, #tpu.memory_space<vmem>>, %arg2: memref<384x128xbf16, #tpu.memory_space<vmem>>, %arg3: memref<1x384xbf16, #tpu.memory_space<vmem>>, %arg4: memref<8x384xbf16, #tpu.memory_space<vmem>>) attributes {dimension_semantics = [#tpu.dimension_semantics<parallel>], iteration_bounds = array<i64: 1>, scalar_prefetch = 0 : i64, scratch_operands = 0 : i64, tpu.core_type = #tpu.core_type<tc>, window_params = [{transform_indices = @transform_0, window_bounds = array<i64: 8, 128>}, {pipeline_mode = #tpu.pipeline_mode<synchronous>, transform_indices = @transform_1, window_bounds = array<i64: 384, 128>}, {pipeline_mode = #tpu.pipeline_mode<synchronous>, transform_indices = @transform_2, window_bounds = array<i64: 1, 384>}, {transform_indices = @transform_3, window_bounds = array<i64: 8, 384>}]} {
    %c0 = arith.constant 0 : index
    %c0_0 = arith.constant 0 : index
    %0 = vector.load %arg1[%c0, %c0_0] : memref<8x128xbf16, #tpu.memory_space<vmem>>, vector<8x128xbf16>
    %c0_1 = arith.constant 0 : index
    %c0_2 = arith.constant 0 : index
    %1 = vector.load %arg2[%c0_1, %c0_2] : memref<384x128xbf16, #tpu.memory_space<vmem>>, vector<384x128xbf16>
    %cst = arith.constant dense<0.000000e+00> : vector<8x384xf32>
    %2 = tpu.matmul %0, %1, %cst {dimension_numbers = #tpu.dot_dimension_numbers<[1], [1], [0], [0], [0, 0, 1, 0], [], []>} : vector<8x128xbf16>, vector<384x128xbf16>, vector<8x384xf32> -> vector<8x384xf32>
    %c0_3 = arith.constant 0 : index
    %c0_4 = arith.constant 0 : index
    %3 = vector.load %arg3[%c0_3, %c0_4] : memref<1x384xbf16, #tpu.memory_space<vmem>>, vector<1x384xbf16>
    %4 = arith.extf %3 : vector<1x384xbf16> to vector<1x384xf32>
    %5 = vector.broadcast %4 : vector<1x384xf32> to vector<8x384xf32>
    %6 = arith.addf %2, %5 : vector<8x384xf32>
    %7 = arith.truncf %6 : vector<8x384xf32> to vector<8x384xbf16>
    %c0_5 = arith.constant 0 : index
    %c0_6 = arith.constant 0 : index
    %8 = vector.load %arg4[%c0_5, %c0_6] : memref<8x384xbf16, #tpu.memory_space<vmem>>, vector<8x384xbf16>
    tpu.vector_store %arg4[%c0_5, %c0_6], %7 {strides = array<i32>} : memref<8x384xbf16, #tpu.memory_space<vmem>>, vector<8x384xbf16>,
    return
  }
  func.func @transform_0(%arg0: i32) -> (i32, i32) {
    %c0_i32 = arith.constant 0 : i32
    %c0_i32_0 = arith.constant 0 : i32
    return %arg0, %c0_i32 : i32, i32
  }
  func.func @transform_1(%arg0: i32) -> (i32, i32) {
    %c0_i32 = arith.constant 0 : i32
    %c0_i32_0 = arith.constant 0 : i32
    %c0_i32_1 = arith.constant 0 : i32
    return %c0_i32, %c0_i32_0 : i32, i32
  }
  func.func @transform_2(%arg0: i32) -> (i32, i32) {
    %c0_i32 = arith.constant 0 : i32
    %c0_i32_0 = arith.constant 0 : i32
    %c0_i32_1 = arith.constant 0 : i32
    return %c0_i32, %c0_i32_0 : i32, i32
  }
  func.func @transform_3(%arg0: i32) -> (i32, i32) {
    %c0_i32 = arith.constant 0 : i32
    %c0_i32_0 = arith.constant 0 : i32
    return %arg0, %c0_i32 : i32, i32
  }
}

</mosaic_0001>

<bundles_post_ra>
// kernel: tpu_custom_call.1
= control target key start
LH: loop header
LB: loop body
LE: loop exit
PB: predicated region body
PF: predicated region fallthrough
CT: control target
= control target key end

     0   :  { %8 = vsyncpa [#allocation3], 0  ;;  %s588_s0 = inlined_call_operand.hbm [shape: bf16[8,128], index: 0, kind: input, shape index: {}]   ;;  %s589_s1 = inlined_call_operand.hbm [shape: bf16[384,128], index: 1, kind: input, shape index: {}]   ;;  %s590_s2 = inlined_call_operand.vmem [shape: bf16[1,384], index: 2, kind: input, shape index: {}]   ;;  %s591_s3 = inlined_call_operand.hbm [shape: bf16[8,384], index: 3, kind: output, shape index: {}]  }
   0x1   :  { %9 = vsyncpa [#allocation6], 0 }
   0x2   :  { %10 = vsyncpa [#allocation4], 0  ;;  %s549_s12 = smov [#allocation2]   ;;  %s550_s14 = smov [#allocation5]  }
   0x3   :  { %s17_s13 = sshll.u32 %s549_s12, 4  ;;  %s26_s15 = sshll.u32 %s550_s14, 4  ;;  %s18_s13 = int_to_ptr.vmem [resolvable:$true] %s17_s13  ;;  %s27_s15 = int_to_ptr.vmem [resolvable:$true] %s26_s15 }
   0x4   :  { %s491_s16 = scalar_lea.vmem %s18_s13, 64  ;;  %p496_p1 = scmp.lt.s32.totalorder %s18_s13, %s18_s13 }
   0x5   :  { %p492_p0 = scmp.ne.s32.totalorder %s18_s13, %s491_s16  ;;  %p497_p2 = scmp.lt.s32.totalorder %s491_s16, %s491_s16 }
   0x7   :  { %p498_p3 = por %p497_p2, %p496_p1 }
   0x9   :  { %p499_p4 = pnand %p498_p3, %p492_p0 }
   0xb   :  { %502 = shalt.err (!%p499_p4)
}
   0xc   :  { %20 = dma.hbm_to_vmem [thread:$0]  %s588_s0, 64, %s18_s13, [#allocation3]  }
   0xd   :  { %s511_s19 = scalar_lea.vmem %s27_s15, 3072  ;;  %p516_p6 = scmp.lt.s32.totalorder %s27_s15, %s27_s15 }
   0xe   :  { %p512_p5 = scmp.ne.s32.totalorder %s27_s15, %s511_s19  ;;  %p517_p7 = scmp.lt.s32.totalorder %s511_s19, %s511_s19 }
  0x10   :  { %p518_p8 = por %p517_p7, %p516_p6 }
  0x12   :  { %p519_p9 = pnand %p518_p8, %p512_p5 }
  0x14   :  { %522 = shalt.err (!%p519_p9)
}
  0x15   :  { %s551_s20 = smov 64   ;;  %s552_s21 = smov 4  }
  0x16   :  { %32 = dma.hbm_to_vmem [thread:$0]  %s589_s1, 3072, %s27_s15, [#allocation6], %s551_s20, %s551_s20, %s552_s21  }
  0x17   :  { %543 = dma.done.wait [#allocation3], 64  }
  0x18   :  { %544 = vsyncadd [#allocation3], 4294967232 }
  0x19   :  { %545 = dma.done.wait [#allocation6], 3072  }
  0x1a   :  { %546 = vsyncadd [#allocation6], 4294964224  ;;  %v553_v0 = vmov 0.0   ;;  %vm554_vm0 = vmmov 0   ;;  %v459_v1 = vld [vmem:[#allocation5 + $0x78] sm:$0xff]   ;;  %v462_v4 = vld [vmem:[#allocation5 + $0x70] sm:$0xff]   ;;  %v94_v26 = vlaneseq }
  0x1b   :  { %432 = vmatprep.subr.bf16.mxu1 %v553_v0  ;;  %448 = vmatprep.mubr.msk.bf16.mxu1 %vm554_vm0, %v553_v0  ;;  %v460_v2 = vld [vmem:[#allocation5 + $0xb8] sm:$0xff]   ;;  %v463_v5 = vld [vmem:[#allocation5 + $0xb0] sm:$0xff]   ;;  %v465_v7 = vld [vmem:[#allocation5 + $0x68] sm:$0xff]   ;;  %s555_s24 = smov [#allocation7]  }
  0x1c   :  { %405 = vmatprep.subr.bf16.mxu0 %v459_v1  ;;  %v461_v3 = vld [vmem:[#allocation5 + $0x38] sm:$0xff]   ;;  %433 = vmatpush3.bf16.xpose.msra.mxu1 %v460_v2  ;;  %v464_v6 = vld [vmem:[#allocation5 + $0x30] sm:$0xff]   ;;  %v466_v8 = vld [vmem:[#allocation5 + $0xa8] sm:$0xff]   ;;  %v95_v27 = vshrl.u32 %v94_v26, 7  ;;  %s367_s25 = sshll.u32 %s555_s24, 4  ;;  %s368_s25 = int_to_ptr.vmem [resolvable:$true] %s367_s25 }
  0x1d   :  { %406 = vmatpush3.bf16.xpose.msra.mxu0 %v461_v3  ;;  %434 = vmatprep.subr.bf16.mxu1 %v553_v0  ;;  %v467_v9 = vld [vmem:[#allocation5 + $0x28] sm:$0xff]   ;;  %v468_v10 = vld [vmem:[#allocation5 + $0x60] sm:$0xff]   ;;  %v42_v13 = vld [vmem:[#allocation2] sm:$0xf]  ;;  %p528_p11 = scmp.lt.s32.totalorder %s368_s25, %s368_s25 }
  0x1e   :  { %407 = vmatprep.subr.bf16.mxu0 %v462_v4  ;;  %v469_v11 = vld [vmem:[#allocation5 + $0xa0] sm:$0xff]   ;;  %v471_v14 = vld [vmem:[#allocation5 + $0x58] sm:$0xff]   ;;  %421 = vmatprep.mubr.bf16.mxu0 %v42_v13  ;;  %v474_v17 = vld [vmem:[#allocation5 + $0x50] sm:$0xff]   ;;  %v104_v29 = vsub.s32 4, %v95_v27  ;;  %v96_v31 = vsub.s32 0, %v95_v27  ;;  %v100_v32 = vsub.s32 2, %v95_v27 }
  0x1f   :  { %v470_v12 = vld [vmem:[#allocation5 + $0x20] sm:$0xff]   ;;  %v472_v15 = vld [vmem:[#allocation5 + $0x98] sm:$0xff]   ;;  %v475_v18 = vld [vmem:[#allocation5 + $0x90] sm:$0xff]  }
  0x20   :  { %v473_v16 = vld [vmem:[#allocation5 + $0x18] sm:$0xff]   ;;  %v476_v19 = vld [vmem:[#allocation5 + $0x10] sm:$0xff]   ;;  %v477_v20 = vld [vmem:[#allocation5 + $0x48] sm:$0xff]  }
  0x21   :  { %v478_v21 = vld [vmem:[#allocation5 + $0x88] sm:$0xff]   ;;  %v480_v23 = vld [vmem:[#allocation5 + $0x40] sm:$0xff]   ;;  %v91_v28 = vld [vmem:[%s590_s2] sm:$0x7]  ;;  %s523_s2 = scalar_lea.vmem %s368_s25, 192 }
  0x22   :  { %v479_v22 = vld [vmem:[#allocation5 + $0x8] sm:$0xff]   ;;  %v481_v24 = vld [vmem:[#allocation5 + $0x80] sm:$0xff]   ;;  %v92_v30 = vunpack.c.l.bf16 %v91_v28  ;;  %p524_p10 = scmp.ne.s32.totalorder %s368_s25, %s523_s2  ;;  %p529_p12 = scmp.lt.s32.totalorder %s523_s2, %s523_s2 }
  0x23   :  { %v482_v25 = vld [vmem:[#allocation5] sm:$0xff]  }
  0x24   :  { %435 = vmatpush3.bf16.xpose.msra.mxu1 %v463_v5  ;;  %v105_v33 = vrot.slane %v92_v30, %v104_v29  ;;  %v97_v34 = vrot.slane %v92_v30, %v96_v31  ;;  %v101_v35 = vrot.slane %v92_v30, %v100_v32  ;;  %p530_p13 = por %p529_p12, %p528_p11 }
  0x25   :  { %408 = vmatpush3.bf16.xpose.msra.mxu0 %v464_v6  ;;  %436 = vmatprep.subr.bf16.mxu1 %v553_v0 }
  0x26   :  { %409 = vmatprep.subr.bf16.mxu0 %v465_v7  ;;  %v120_v36 = vrot.slane %v105_v33, %v96_v31  ;;  %v112_v38 = vrot.slane %v97_v34, %v96_v31  ;;  %v116_v39 = vrot.slane %v101_v35, %v96_v31  ;;  %p531_p0 = pnand %p530_p13, %p524_p10 }
  0x2c   :  { %437 = vmatpush3.bf16.xpose.msra.mxu1 %v466_v8 }
  0x2d   :  { %410 = vmatpush3.bf16.xpose.msra.mxu0 %v467_v9  ;;  %438 = vmatprep.subr.bf16.mxu1 %v553_v0 }
  0x2e   :  { %411 = vmatprep.subr.bf16.mxu0 %v468_v10 }
  0x34   :  { %439 = vmatpush3.bf16.xpose.msra.mxu1 %v469_v11 }
  0x35   :  { %412 = vmatpush3.bf16.xpose.msra.mxu0 %v470_v12  ;;  %440 = vmatprep.subr.bf16.mxu1 %v553_v0 }
  0x36   :  { %413 = vmatprep.subr.bf16.mxu0 %v471_v14 }
  0x3c   :  { %441 = vmatpush3.bf16.xpose.msra.mxu1 %v472_v15 }
  0x3d   :  { %414 = vmatpush3.bf16.xpose.msra.mxu0 %v473_v16  ;;  %442 = vmatprep.subr.bf16.mxu1 %v553_v0 }
  0x3e   :  { %415 = vmatprep.subr.bf16.mxu0 %v474_v17 }
  0x44   :  { %443 = vmatpush3.bf16.xpose.msra.mxu1 %v475_v18 }
  0x45   :  { %416 = vmatpush3.bf16.xpose.msra.mxu0 %v476_v19  ;;  %444 = vmatprep.subr.bf16.mxu1 %v553_v0 }
  0x46   :  { %417 = vmatprep.subr.bf16.mxu0 %v477_v20 }
  0x4c   :  { %445 = vmatpush3.bf16.xpose.msra.mxu1 %v478_v21 }
  0x4d   :  { %418 = vmatpush3.bf16.xpose.msra.mxu0 %v479_v22  ;;  %446 = vmatprep.subr.bf16.mxu1 %v553_v0 }
  0x4e   :  { %419 = vmatprep.subr.bf16.mxu0 %v480_v23 }
  0x54   :  { %447 = vmatpush3.bf16.xpose.msra.mxu1 %v481_v24 }
  0x55   :  { %420 = vmatpush3.bf16.xpose.msra.mxu0 %v482_v25 }
  0x5b   :  { %449 = vmatmul.mubr.bf16.vlgmr.msra.gmra.mxu1 %v42_v13 }
  0x5c   :  { %422 = vmatmul.mubr.bf16.vlgmr.msra.gmra.mxu0 %v42_v13 }
 0x11b   :  { %v340_v37 = vpop.f32.mrf.mxu1 }
 0x11c   :  { %v341_v40 = vadd.f32 %v340_v37, %v120_v36  ;;  %v299_v41 = vpop.f32.mrf.mxu0 }
 0x11d   :  { %v450_v42 = vpop.f32.mrf.mxu1  ;;  %v300_v45 = vadd.f32 %v299_v41, %v112_v38 }
 0x11e   :  { %v404_v43 = vpack.c.bf16 %v341_v40, %v341_v40  ;;  %v301_v44 = vpop.f32.mrf.mxu0 }
 0x11f   :  { %v302_v46 = vadd.f32 %v301_v44, %v116_v39  ;;  %v343_v47 = vpop.f32.mrf.mxu1 }
 0x120   :  { %360 = vst [vmem:[#allocation7 + $0x8] sm:$0xf] %v404_v43  ;;  %v303_v48 = vpop.f32.mrf.mxu0 }
 0x121   :  { %v403_v49 = vpack.c.bf16 %v302_v46, %v300_v45  ;;  %v451_v50 = vpop.f32.mrf.mxu1 }
 0x122   :  { %v304_v51 = vpop.f32.mrf.mxu0 }
 0x123   :  { %359 = vst [vmem:[#allocation7] sm:$0xff] %v403_v49 }
 0x124   :  { %534 = shalt.err (!%p531_p0)
}
 0x125   :  { %370 = dma.vmem_to_hbm [thread:$0]  %s368_s25, 192, %s591_s3, [#allocation4]  }
 0x126   :  { %547 = dma.done.wait [#allocation4], 192  }
 0x127   :  { %548 = vsyncadd [#allocation4], 4294967104 }
 0x128   :  { %374 = vsyncpa [#allocation3], 1 }
 0x129   :  { %375 = vsyncpa [#allocation6], 1 }
 0x12a   :  { %376 = vsyncpa [#allocation4], 1 }

</bundles_post_ra>
